<compile_context>
chip_gen: v7x
topology: tpu7x:2x2x1
jax: 0.10.0
libtpu: 0.0.40
codegen_flags: <defaults>
</compile_context>

<pallas_src>
import jax
import jax.numpy as jnp
from jax import lax
from jax.experimental import pallas as pl
from jax.experimental.pallas import tpu as pltpu

LANES = 128                  # TPU vreg lane width
MAX_TILE_LANES = 1024 * 1024  # 40 MiB of double-buffered VMEM -> v7x-safe


def simplenet_kernel(w1_ref, b1_ref, w2_ref, b2_ref, x_ref, o_ref):
    """One batch tile.

    x_ref : [3, S, 128] f32 VMEM   (feature, sublane-block, lane)
    o_ref : [2, S, 128] f32 VMEM
    w1_ref: [3, 3] f32 SMEM (PyTorch linear1.weight)
    b1_ref: [3]    f32 SMEM
    w2_ref: [2, 3] f32 SMEM (PyTorch linear2.weight)
    b2_ref: [2]    f32 SMEM
    """
    S = x_ref.shape[1]

    # Inner chunk size (sublanes) over the block: keeps ~8 live [chunk,128]
    # arrays at a few vregs each instead of spilling on MB-scale blocks.
    if S % 32 == 0:
        chunk = 32
    elif S % 8 == 0:
        chunk = 8
    else:
        chunk = S               # tiny-batch case (block == full array)
    n_chunks = S // chunk

    # Hoist the 15 SMEM scalar reads (and their splats) above the chunk loop;
    # JAX does not CSE per-iteration broadcast_in_dim.
    w1 = [[w1_ref[i, j] for j in range(3)] for i in range(3)]
    b1 = [b1_ref[i] for i in range(3)]
    w2 = [[w2_ref[k, j] for j in range(3)] for k in range(2)]
    b2 = [b2_ref[k] for k in range(2)]

    def do_chunk(c):
        s0 = pl.multiple_of(c * chunk, chunk)
        sl = pl.ds(s0, chunk)
        x0 = x_ref[0, sl, :]    # [chunk, 128] dense slabs
        x1 = x_ref[1, sl, :]
        x2 = x_ref[2, sl, :]
        # Layer 1: h = relu(W1 @ x + b1), unrolled VPU scalar*vector FMAs.
        h = []
        for i in range(3):
            hi = w1[i][0] * x0 + w1[i][1] * x1 + w1[i][2] * x2 + b1[i]
            h.append(jnp.maximum(hi, 0.0))
        # Layer 2: y = W2 @ h + b2; stores are full (chunk, 128) slabs.
        for k in range(2):
            yk = w2[k][0] * h[0] + w2[k][1] * h[1] + w2[k][2] * h[2] + b2[k]
            o_ref[k, sl, :] = yk

    if n_chunks == 1:
        do_chunk(0)
    else:
        def body(c, carry):
            do_chunk(c)
            return carry
        lax.fori_loop(0, n_chunks, body, 0,
                      unroll=True if n_chunks <= 16 else 8)


def _round_up(n, m):
    return ((n + m - 1) // m) * m


def simplenet_forward_packed(x_packed, w1, b1, w2, b2, *, lane_tile):
    """Forward pass on the packed layout.

    x_packed : [3, S_total, 128] f32 (batch packed dense on sublanes+lanes)
    returns  : [2, S_total, 128] f32 in the same packed layout.
    lane_tile must divide S_total*128 and be a multiple of 128.
    """
    _, S_total, lanes = x_packed.shape
    assert lanes == LANES
    b_pad = S_total * LANES
    tb = int(lane_tile)
    assert tb % LANES == 0 and b_pad % tb == 0
    s_tile = tb // LANES
    grid = (b_pad // tb,)

    # Double-buffered in + out blocks: 2 * (3 + 2) * tb * 4 bytes.
    vmem_bytes = 2 * (3 + 2) * tb * 4
    vmem_limit = int(min(48 << 20, max(32 << 20, vmem_bytes + (8 << 20))))

    # Weights/biases: a handful of f32 scalars -> SMEM, resident across tiles.
    smem_spec = pl.BlockSpec(memory_space=pltpu.MemorySpace.SMEM)

    return pl.pallas_call(
        simplenet_kernel,
        out_shape=jax.ShapeDtypeStruct((2, S_total, LANES), jnp.float32),
        grid=grid,
        in_specs=[
            smem_spec,                                           # w1 [3, 3]
            smem_spec,                                           # b1 [3]
            smem_spec,                                           # w2 [2, 3]
            smem_spec,                                           # b2 [2]
            pl.BlockSpec((3, s_tile, LANES), lambda i: (0, i, 0)),
        ],
        out_specs=pl.BlockSpec((2, s_tile, LANES), lambda i: (0, i, 0)),
        compiler_params=pltpu.CompilerParams(
            dimension_semantics=("parallel",),   # batch tiles are independent
            vmem_limit_bytes=vmem_limit,
        ),
    )(
        jnp.asarray(w1, jnp.float32),
        jnp.asarray(b1, jnp.float32),
        jnp.asarray(w2, jnp.float32),
        jnp.asarray(b2, jnp.float32),
        x_packed,
    )


def simplenet_forward(x, w1, b1, w2, b2, *, batch_tile=256 * 1024):
    """PyTorch-layout convenience wrapper.

    x: [B, 3] f32; w1: [3, 3]; b1: [3]; w2: [2, 3]; b2: [2]
    (PyTorch nn.Linear conventions).  Returns [B, 2] f32.
    """
    B = x.shape[0]
    x = jnp.asarray(x, jnp.float32)

    # Lane tile: multiple of 1024 (8 dense sublanes) for large batches, capped
    # by batch_tile, a v7x-safe VMEM budget, and half the batch (so the
    # "parallel" grid has >= 2 steps and feeds both TensorCores when possible).
    b_min = _round_up(max(B, 1), LANES)
    if b_min <= 1024:
        tb = b_min
    else:
        tb = min(int(batch_tile), b_min, MAX_TILE_LANES)
        tb = max(1024, (tb // 1024) * 1024)
        half = max(1024, ((b_min // 2) // 1024) * 1024)
        tb = min(tb, half)
    b_pad = _round_up(B, tb)

    # Relayout to the packed [3, Bp//128, 128] form.
    # TODO(synk): if the producer/consumer can keep this packed layout, call
    # simplenet_forward_packed directly and skip the transpose/pad/transpose
    # passes below (they roughly triple end-to-end HBM traffic otherwise).
    if b_pad != B:
        x = jnp.pad(x, ((0, b_pad - B), (0, 0)))
    x_packed = x.T.reshape(3, b_pad // LANES, LANES)

    out_packed = simplenet_forward_packed(x_packed, w1, b1, w2, b2,
                                          lane_tile=tb)

    # NOTE: padded batch lanes carry y = W2 @ relu(b1) + b2, not zeros; the
    # slice below must stay before any downstream use of the output.
    return out_packed.reshape(2, b_pad)[:, :B].T


if __name__ == "__main__":
    key = jax.random.PRNGKey(0)
    kx, k1, k2, k3, k4 = jax.random.split(key, 5)

    B = 8
    # Deterministic params mimicking PyTorch's U(-1/sqrt(fan_in), 1/sqrt(fan_in)).
    bound = 1.0 / jnp.sqrt(3.0)
    x = jax.random.normal(kx, (B, 3), dtype=jnp.float32)
    w1 = jax.random.uniform(k1, (3, 3), jnp.float32, -bound, bound)   # linear1.weight
    b1 = jax.random.uniform(k2, (3,), jnp.float32, -bound, bound)     # linear1.bias
    w2 = jax.random.uniform(k3, (2, 3), jnp.float32, -bound, bound)   # linear2.weight
    b2 = jax.random.uniform(k4, (2,), jnp.float32, -bound, bound)     # linear2.bias

    fwd = jax.jit(simplenet_forward)
    out = jax.block_until_ready(fwd(x, w1, b1, w2, b2))

    # Reference in plain JAX (same math as the PyTorch forward).
    ref = jnp.maximum(x @ w1.T + b1, 0.0) @ w2.T + b2
    assert out.shape == (B, 2)
    assert jnp.allclose(out, ref, atol=1e-5, rtol=1e-5)

    print("KERNEL_OK")
</pallas_src>

<mosaic_0001>
module attributes {stable_mosaic.version = 11 : i64} {
  func.func @simplenet_kernel(%arg0: i32, %arg1: memref<3x3xf32, #tpu.memory_space<smem>>, %arg2: memref<3xf32, #tpu.memory_space<smem>>, %arg3: memref<2x3xf32, #tpu.memory_space<smem>>, %arg4: memref<2xf32, #tpu.memory_space<smem>>, %arg5: memref<3x1x128xf32, #tpu.memory_space<vmem>>, %arg6: memref<2x1x128xf32, #tpu.memory_space<vmem>>) attributes {dimension_semantics = [#tpu.dimension_semantics<parallel>], iteration_bounds = array<i64: 1>, scalar_prefetch = 0 : i64, scratch_operands = 0 : i64, tpu.core_type = #tpu.core_type<tc>, window_params = [{transform_indices = @transform_0, window_bounds = array<i64: 3, 3>}, {transform_indices = @transform_1, window_bounds = array<i64: 3>}, {transform_indices = @transform_2, window_bounds = array<i64: 2, 3>}, {transform_indices = @transform_3, window_bounds = array<i64: 2>}, {transform_indices = @transform_4, window_bounds = array<i64: 3, 1, 128>}, {transform_indices = @transform_5, window_bounds = array<i64: 2, 1, 128>}]} {
    %c0 = arith.constant 0 : index
    %c0_0 = arith.constant 0 : index
    %0 = memref.load %arg1[%c0, %c0_0] : memref<3x3xf32, #tpu.memory_space<smem>>
    %c0_1 = arith.constant 0 : index
    %c1 = arith.constant 1 : index
    %1 = memref.load %arg1[%c0_1, %c1] : memref<3x3xf32, #tpu.memory_space<smem>>
    %c0_2 = arith.constant 0 : index
    %c2 = arith.constant 2 : index
    %2 = memref.load %arg1[%c0_2, %c2] : memref<3x3xf32, #tpu.memory_space<smem>>
    %c1_3 = arith.constant 1 : index
    %c0_4 = arith.constant 0 : index
    %3 = memref.load %arg1[%c1_3, %c0_4] : memref<3x3xf32, #tpu.memory_space<smem>>
    %c1_5 = arith.constant 1 : index
    %c1_6 = arith.constant 1 : index
    %4 = memref.load %arg1[%c1_5, %c1_6] : memref<3x3xf32, #tpu.memory_space<smem>>
    %c1_7 = arith.constant 1 : index
    %c2_8 = arith.constant 2 : index
    %5 = memref.load %arg1[%c1_7, %c2_8] : memref<3x3xf32, #tpu.memory_space<smem>>
    %c2_9 = arith.constant 2 : index
    %c0_10 = arith.constant 0 : index
    %6 = memref.load %arg1[%c2_9, %c0_10] : memref<3x3xf32, #tpu.memory_space<smem>>
    %c2_11 = arith.constant 2 : index
    %c1_12 = arith.constant 1 : index
    %7 = memref.load %arg1[%c2_11, %c1_12] : memref<3x3xf32, #tpu.memory_space<smem>>
    %c2_13 = arith.constant 2 : index
    %c2_14 = arith.constant 2 : index
    %8 = memref.load %arg1[%c2_13, %c2_14] : memref<3x3xf32, #tpu.memory_space<smem>>
    %c0_15 = arith.constant 0 : index
    %9 = memref.load %arg2[%c0_15] : memref<3xf32, #tpu.memory_space<smem>>
    %c1_16 = arith.constant 1 : index
    %10 = memref.load %arg2[%c1_16] : memref<3xf32, #tpu.memory_space<smem>>
    %c2_17 = arith.constant 2 : index
    %11 = memref.load %arg2[%c2_17] : memref<3xf32, #tpu.memory_space<smem>>
    %c0_18 = arith.constant 0 : index
    %c0_19 = arith.constant 0 : index
    %12 = memref.load %arg3[%c0_18, %c0_19] : memref<2x3xf32, #tpu.memory_space<smem>>
    %c0_20 = arith.constant 0 : index
    %c1_21 = arith.constant 1 : index
    %13 = memref.load %arg3[%c0_20, %c1_21] : memref<2x3xf32, #tpu.memory_space<smem>>
    %c0_22 = arith.constant 0 : index
    %c2_23 = arith.constant 2 : index
    %14 = memref.load %arg3[%c0_22, %c2_23] : memref<2x3xf32, #tpu.memory_space<smem>>
    %c1_24 = arith.constant 1 : index
    %c0_25 = arith.constant 0 : index
    %15 = memref.load %arg3[%c1_24, %c0_25] : memref<2x3xf32, #tpu.memory_space<smem>>
    %c1_26 = arith.constant 1 : index
    %c1_27 = arith.constant 1 : index
    %16 = memref.load %arg3[%c1_26, %c1_27] : memref<2x3xf32, #tpu.memory_space<smem>>
    %c1_28 = arith.constant 1 : index
    %c2_29 = arith.constant 2 : index
    %17 = memref.load %arg3[%c1_28, %c2_29] : memref<2x3xf32, #tpu.memory_space<smem>>
    %c0_30 = arith.constant 0 : index
    %18 = memref.load %arg4[%c0_30] : memref<2xf32, #tpu.memory_space<smem>>
    %c1_31 = arith.constant 1 : index
    %19 = memref.load %arg4[%c1_31] : memref<2xf32, #tpu.memory_space<smem>>
    %c0_i32 = arith.constant 0 : i32
    %20 = tpu.assume_multiple %c0_i32, 1 : i32
    %c0_32 = arith.constant 0 : index
    %21 = arith.index_cast %20 : i32 to index
    %c0_33 = arith.constant 0 : index
    %22 = vector.load %arg5[%c0_32, %21, %c0_33] : memref<3x1x128xf32, #tpu.memory_space<vmem>>, vector<1x1x128xf32>
    %23 = vector.shape_cast %22 : vector<1x1x128xf32> to vector<1x128xf32>
    %c1_34 = arith.constant 1 : index
    %24 = arith.index_cast %20 : i32 to index
    %c0_35 = arith.constant 0 : index
    %25 = vector.load %arg5[%c1_34, %24, %c0_35] : memref<3x1x128xf32, #tpu.memory_space<vmem>>, vector<1x1x128xf32>
    %26 = vector.shape_cast %25 : vector<1x1x128xf32> to vector<1x128xf32>
    %c2_36 = arith.constant 2 : index
    %27 = arith.index_cast %20 : i32 to index
    %c0_37 = arith.constant 0 : index
    %28 = vector.load %arg5[%c2_36, %27, %c0_37] : memref<3x1x128xf32, #tpu.memory_space<vmem>>, vector<1x1x128xf32>
    %29 = vector.shape_cast %28 : vector<1x1x128xf32> to vector<1x128xf32>
    %30 = vector.broadcast %0 : f32 to vector<1x128xf32>
    %31 = arith.mulf %30, %23 : vector<1x128xf32>
    %32 = vector.broadcast %1 : f32 to vector<1x128xf32>
    %33 = arith.mulf %32, %26 : vector<1x128xf32>
    %34 = arith.addf %31, %33 : vector<1x128xf32>
    %35 = vector.broadcast %2 : f32 to vector<1x128xf32>
    %36 = arith.mulf %35, %29 : vector<1x128xf32>
    %37 = arith.addf %34, %36 : vector<1x128xf32>
    %38 = vector.broadcast %9 : f32 to vector<1x128xf32>
    %39 = arith.addf %37, %38 : vector<1x128xf32>
    %cst = arith.constant 0.000000e+00 : f32
    %40 = vector.broadcast %cst : f32 to vector<1x128xf32>
    %41 = arith.maximumf %39, %40 : vector<1x128xf32>
    %42 = vector.broadcast %3 : f32 to vector<1x128xf32>
    %43 = arith.mulf %42, %23 : vector<1x128xf32>
    %44 = vector.broadcast %4 : f32 to vector<1x128xf32>
    %45 = arith.mulf %44, %26 : vector<1x128xf32>
    %46 = arith.addf %43, %45 : vector<1x128xf32>
    %47 = vector.broadcast %5 : f32 to vector<1x128xf32>
    %48 = arith.mulf %47, %29 : vector<1x128xf32>
    %49 = arith.addf %46, %48 : vector<1x128xf32>
    %50 = vector.broadcast %10 : f32 to vector<1x128xf32>
    %51 = arith.addf %49, %50 : vector<1x128xf32>
    %cst_38 = arith.constant 0.000000e+00 : f32
    %52 = vector.broadcast %cst_38 : f32 to vector<1x128xf32>
    %53 = arith.maximumf %51, %52 : vector<1x128xf32>
    %54 = vector.broadcast %6 : f32 to vector<1x128xf32>
    %55 = arith.mulf %54, %23 : vector<1x128xf32>
    %56 = vector.broadcast %7 : f32 to vector<1x128xf32>
    %57 = arith.mulf %56, %26 : vector<1x128xf32>
    %58 = arith.addf %55, %57 : vector<1x128xf32>
    %59 = vector.broadcast %8 : f32 to vector<1x128xf32>
    %60 = arith.mulf %59, %29 : vector<1x128xf32>
    %61 = arith.addf %58, %60 : vector<1x128xf32>
    %62 = vector.broadcast %11 : f32 to vector<1x128xf32>
    %63 = arith.addf %61, %62 : vector<1x128xf32>
    %cst_39 = arith.constant 0.000000e+00 : f32
    %64 = vector.broadcast %cst_39 : f32 to vector<1x128xf32>
    %65 = arith.maximumf %63, %64 : vector<1x128xf32>
    %66 = vector.broadcast %12 : f32 to vector<1x128xf32>
    %67 = arith.mulf %66, %41 : vector<1x128xf32>
    %68 = vector.broadcast %13 : f32 to vector<1x128xf32>
    %69 = arith.mulf %68, %53 : vector<1x128xf32>
    %70 = arith.addf %67, %69 : vector<1x128xf32>
    %71 = vector.broadcast %14 : f32 to vector<1x128xf32>
    %72 = arith.mulf %71, %65 : vector<1x128xf32>
    %73 = arith.addf %70, %72 : vector<1x128xf32>
    %74 = vector.broadcast %18 : f32 to vector<1x128xf32>
    %75 = arith.addf %73, %74 : vector<1x128xf32>
    %c0_40 = arith.constant 0 : index
    %76 = arith.index_cast %20 : i32 to index
    %c0_41 = arith.constant 0 : index
    %77 = vector.load %arg6[%c0_40, %76, %c0_41] : memref<2x1x128xf32, #tpu.memory_space<vmem>>, vector<1x1x128xf32>
    %78 = vector.shape_cast %77 : vector<1x1x128xf32> to vector<1x128xf32>
    %79 = vector.shape_cast %75 : vector<1x128xf32> to vector<1x1x128xf32>
    tpu.vector_store %arg6[%c0_40, %76, %c0_41], %79 {strides = array<i32>} : memref<2x1x128xf32, #tpu.memory_space<vmem>>, vector<1x1x128xf32>,
    %80 = vector.broadcast %15 : f32 to vector<1x128xf32>
    %81 = arith.mulf %80, %41 : vector<1x128xf32>
    %82 = vector.broadcast %16 : f32 to vector<1x128xf32>
    %83 = arith.mulf %82, %53 : vector<1x128xf32>
    %84 = arith.addf %81, %83 : vector<1x128xf32>
    %85 = vector.broadcast %17 : f32 to vector<1x128xf32>
    %86 = arith.mulf %85, %65 : vector<1x128xf32>
    %87 = arith.addf %84, %86 : vector<1x128xf32>
    %88 = vector.broadcast %19 : f32 to vector<1x128xf32>
    %89 = arith.addf %87, %88 : vector<1x128xf32>
    %c1_42 = arith.constant 1 : index
    %90 = arith.index_cast %20 : i32 to index
    %c0_43 = arith.constant 0 : index
    %91 = vector.load %arg6[%c1_42, %90, %c0_43] : memref<2x1x128xf32, #tpu.memory_space<vmem>>, vector<1x1x128xf32>
    %92 = vector.shape_cast %91 : vector<1x1x128xf32> to vector<1x128xf32>
    %93 = vector.shape_cast %89 : vector<1x128xf32> to vector<1x1x128xf32>
    tpu.vector_store %arg6[%c1_42, %90, %c0_43], %93 {strides = array<i32>} : memref<2x1x128xf32, #tpu.memory_space<vmem>>, vector<1x1x128xf32>,
    return
  }
  func.func @transform_0(%arg0: i32) -> (i32, i32) {
    %c0_i32 = arith.constant 0 : i32
    %c0_i32_0 = arith.constant 0 : i32
    %c0_i32_1 = arith.constant 0 : i32
    return %c0_i32, %c0_i32_0 : i32, i32
  }
  func.func @transform_1(%arg0: i32) -> i32 {
    %c0_i32 = arith.constant 0 : i32
    %c0_i32_0 = arith.constant 0 : i32
    return %c0_i32 : i32
  }
  func.func @transform_2(%arg0: i32) -> (i32, i32) {
    %c0_i32 = arith.constant 0 : i32
    %c0_i32_0 = arith.constant 0 : i32
    %c0_i32_1 = arith.constant 0 : i32
    return %c0_i32, %c0_i32_0 : i32, i32
  }
  func.func @transform_3(%arg0: i32) -> i32 {
    %c0_i32 = arith.constant 0 : i32
    %c0_i32_0 = arith.constant 0 : i32
    return %c0_i32 : i32
  }
  func.func @transform_4(%arg0: i32) -> (i32, i32, i32) {
    %c0_i32 = arith.constant 0 : i32
    %c0_i32_0 = arith.constant 0 : i32
    %c0_i32_1 = arith.constant 0 : i32
    return %c0_i32, %arg0, %c0_i32_0 : i32, i32, i32
  }
  func.func @transform_5(%arg0: i32) -> (i32, i32, i32) {
    %c0_i32 = arith.constant 0 : i32
    %c0_i32_0 = arith.constant 0 : i32
    %c0_i32_1 = arith.constant 0 : i32
    return %c0_i32, %arg0, %c0_i32_0 : i32, i32, i32
  }
}

</mosaic_0001>

<bundles_post_ra>
// kernel: simplenet_forward.1
= control target key start
LH: loop header
LB: loop body
LE: loop exit
PB: predicated region body
PF: predicated region fallthrough
CT: control target
= control target key end

     0   :  { %10 = vsyncpa [#allocation3], 0  ;;  %s332_s0 = inlined_call_operand.vmem [shape: f32[3,3], index: 0, kind: input, shape index: {}]   ;;  %s333_s1 = inlined_call_operand.vmem [shape: f32[3], index: 1, kind: input, shape index: {}]   ;;  %s334_s2 = inlined_call_operand.vmem [shape: f32[2,3], index: 2, kind: input, shape index: {}]   ;;  %s335_s3 = inlined_call_operand.vmem [shape: f32[2], index: 3, kind: input, shape index: {}]   ;;  %s336_s4 = inlined_call_operand.vmem [shape: f32[3,1,128], index: 4, kind: input, shape index: {}]   ;;  %s337_s5 = inlined_call_operand.vmem [shape: f32[2,1,128], index: 5, kind: output, shape index: {}]  }
   0x1   :  { %11 = vsyncpa [#allocation5], 0  ;;  %s29_s20 = sshll.u32 %s333_s1, 4  ;;  %s30_s20 = int_to_ptr.vmem [resolvable:$true] %s29_s20 }
   0x2   :  { %12 = vsyncpa [#allocation8], 0  ;;  %s19_s23 = sshll.u32 %s332_s0, 4  ;;  %s184_s24 = scalar_lea.vmem %s30_s20, 16  ;;  %s20_s23 = int_to_ptr.vmem [resolvable:$true] %s19_s23 }
   0x3   :  { %p185_p0 = scmp.ne.s32.totalorder %s30_s20, %s184_s24  ;;  %p189_p1 = scmp.lt.s32.totalorder %s30_s20, %s30_s20 }
   0x4   :  { %p190_p2 = scmp.lt.s32.totalorder %s184_s24, %s184_s24 }
   0x6   :  { %p191_p3 = por %p190_p2, %p189_p1 }
   0x8   :  { %p192_p4 = pnand %p191_p3, %p185_p0 }
   0xa   :  { %195 = shalt.err (!%p192_p4)
}
   0xb   :  { %s238_s25 = smov [#allocation4]   ;;  %s196_s26 = scalar_lea.vmem %s20_s23, 64 }
   0xc   :  { %32 = dma.vmem_to_smem %s30_s20, 16, %s238_s25, [#allocation5]  }
   0xd   :  { %p197_p5 = scmp.ne.s32.totalorder %s20_s23, %s196_s26  ;;  %p201_p6 = scmp.lt.s32.totalorder %s20_s23, %s20_s23 }
   0xe   :  { %p202_p7 = scmp.lt.s32.totalorder %s196_s26, %s196_s26 }
  0x10   :  { %p203_p8 = por %p202_p7, %p201_p6 }
  0x12   :  { %p204_p9 = pnand %p203_p8, %p197_p5 }
  0x14   :  { %207 = shalt.err (!%p204_p9)
}
  0x15   :  { %s239_s1 = smov [#allocation2]   ;;  %s39_s28 = sshll.u32 %s334_s2, 4  ;;  %s40_s28 = int_to_ptr.vmem [resolvable:$true] %s39_s28 }
  0x16   :  { %22 = dma.vmem_to_smem %s20_s23, 64, %s239_s1, [#allocation3]  }
  0x17   :  { %s49_s6 = sshll.u32 %s335_s3, 4  ;;  %s208_s7 = scalar_lea.vmem %s40_s28, 32  ;;  %s50_s6 = int_to_ptr.vmem [resolvable:$true] %s49_s6 }
  0x18   :  { %p209_p10 = scmp.ne.s32.totalorder %s40_s28, %s208_s7  ;;  %p213_p11 = scmp.lt.s32.totalorder %s40_s28, %s40_s28 }
  0x19   :  { %p214_p12 = scmp.lt.s32.totalorder %s208_s7, %s208_s7 }
  0x1b   :  { %p215_p13 = por %p214_p12, %p213_p11 }
  0x1d   :  { %p216_p0 = pnand %p215_p13, %p209_p10 }
  0x1f   :  { %219 = shalt.err (!%p216_p0)
}
  0x20   :  { %s240_s8 = smov [#allocation6]   ;;  %s220_s9 = scalar_lea.vmem %s50_s6, 16 }
  0x21   :  { %42 = dma.vmem_to_smem %s40_s28, 32, %s240_s8, [#allocation5]  }
  0x22   :  { %p221_p1 = scmp.ne.s32.totalorder %s50_s6, %s220_s9  ;;  %p225_p2 = scmp.lt.s32.totalorder %s50_s6, %s50_s6 }
  0x23   :  { %p226_p3 = scmp.lt.s32.totalorder %s220_s9, %s220_s9 }
  0x25   :  { %p227_p4 = por %p226_p3, %p225_p2 }
  0x27   :  { %p228_p5 = pnand %p227_p4, %p221_p1 }
  0x29   :  { %231 = shalt.err (!%p228_p5)
}
  0x2a   :  { %s241_s2 = smov [#allocation7]  }
  0x2b   :  { %52 = dma.vmem_to_smem %s50_s6, 16, %s241_s2, [#allocation8]  }
  0x2c   :  { %232 = dma.done.wait [#allocation3], 64  }
  0x2d   :  { %233 = vsyncadd [#allocation3], 4294967232 }
  0x2e   :  { %234 = dma.done.wait [#allocation5], 48  }
  0x2f   :  { %235 = vsyncadd [#allocation5], 4294967248 }
  0x30   :  { %236 = dma.done.wait [#allocation8], 16  }
  0x31   :  { %237 = vsyncadd [#allocation8], 4294967280 }
  0x32   :  { %67 = sfence }
  0x33   :  { %s68_s3 = sld [smem:[#allocation2]]  ;;  %s161_s10 = sld [smem:[#allocation2 + $0x1]]  ;;  %v88_v0 = vld [vmem:[%s336_s4] sm:$0x1]  ;;  %v177_v1 = vld [vmem:[%s336_s4 + $0x1] sm:$0x1] }
  0x34   :  { %s162_s11 = sld [smem:[#allocation2 + $0x2]]  ;;  %s163_s12 = sld [smem:[#allocation2 + $0x80]]  ;;  %v178_v2 = vld [vmem:[%s336_s4 + $0x2] sm:$0x1] }
  0x35   :  { %s164_s13 = sld [smem:[#allocation2 + $0x81]]  ;;  %s165_s14 = sld [smem:[#allocation2 + $0x82]] }
  0x36   :  { %s166_s15 = sld [smem:[#allocation2 + $0x100]]  ;;  %s284_s16 = sld [smem:[#allocation2 + $0x101]] }
  0x37   :  { %s289_s19 = sld [smem:[#allocation2 + $0x102]]  ;;  %s291_s20 = sld [smem:[#allocation4]] }
  0x38   :  { %s296_s23 = sld [smem:[#allocation4 + $0x1]]  ;;  %s301_s26 = sld [smem:[#allocation4 + $0x2]] }
  0x39   :  { %s303_s1 = sld [smem:[#allocation6]]  ;;  %v95_v3 = vstv %s68_s3  ;;  %v97_v4 = vstv %s161_s10  ;;  %s305_s0 = sld [smem:[#allocation6 + $0x1]] }
  0x3a   :  { %v96_v5 = vmul.f32 %v95_v3, %v88_v0  ;;  %v98_v6 = vmul.f32 %v177_v1, %v97_v4  ;;  %v100_v7 = vstv %s162_s11  ;;  %v106_v8 = vstv %s163_s12  ;;  %s307_s4 = sld [smem:[#allocation6 + $0x80]]  ;;  %s309_s27 = sld [smem:[#allocation6 + $0x81]] }
  0x3b   :  { %v101_v9 = vmul.f32 %v178_v2, %v100_v7  ;;  %v107_v10 = vmul.f32 %v106_v8, %v88_v0  ;;  %v108_v11 = vstv %s164_s13  ;;  %v111_v12 = vstv %s165_s14  ;;  %s311_s28 = sld [smem:[#allocation6 + $0x2]]  ;;  %s86_s30 = sld [smem:[#allocation7]] }
  0x3c   :  { %v99_v13 = vadd.f32 %v98_v6, %v96_v5  ;;  %v109_v14 = vmul.f32 %v177_v1, %v108_v11  ;;  %v112_v15 = vmul.f32 %v178_v2, %v111_v12  ;;  %v117_v16 = vstv %s166_s15  ;;  %s316_s29 = sld [smem:[#allocation6 + $0x82]]  ;;  %s176_s6 = sld [smem:[#allocation7 + $0x1]] }
  0x3d   :  { %v103_v17 = vstv %s291_s20  ;;  %v118_v18 = vmul.f32 %v117_v16, %v88_v0  ;;  %v119_v19 = vstv %s284_s16  ;;  %v122_v20 = vstv %s289_s19 }
  0x3e   :  { %v102_v21 = vadd.f32 %v101_v9, %v99_v13  ;;  %v110_v22 = vadd.f32 %v109_v14, %v107_v10  ;;  %v120_v23 = vmul.f32 %v177_v1, %v119_v19  ;;  %v114_v24 = vstv %s296_s23 }
  0x3f   :  { %v123_v25 = vmul.f32 %v178_v2, %v122_v20  ;;  %v125_v29 = vstv %s301_s26  ;;  %v128_v30 = vstv %s303_s1  ;;  %v130_v35 = vstv %s305_s0 }
  0x40   :  { %v104_v26 = vadd.f32 %v103_v17, %v102_v21  ;;  %v113_v27 = vadd.f32 %v112_v15, %v110_v22  ;;  %v121_v28 = vadd.f32 %v120_v23, %v118_v18  ;;  %v139_v31 = vstv %s307_s4 }
  0x41   :  { %v141_v36 = vstv %s309_s27  ;;  %v133_v41 = vstv %s311_s28  ;;  %v136_v50 = vstv %s86_s30 }
  0x42   :  { %v105_v32 = vmax.f32 %v104_v26, 0.0  ;;  %v115_v33 = vadd.f32 %v114_v24, %v113_v27  ;;  %v124_v34 = vadd.f32 %v123_v25, %v121_v28  ;;  %v144_v42 = vstv %s316_s29 }
  0x43   :  { %v147_v51 = vstv %s176_s6 }
  0x44   :  { %v116_v37 = vmax.f32 %v115_v33, 0.0  ;;  %v126_v38 = vadd.f32 %v125_v29, %v124_v34  ;;  %v129_v39 = vmul.f32 %v128_v30, %v105_v32  ;;  %v140_v40 = vmul.f32 %v139_v31, %v105_v32 }
  0x46   :  { %v127_v43 = vmax.f32 %v126_v38, 0.0  ;;  %v131_v44 = vmul.f32 %v130_v35, %v116_v37  ;;  %v142_v45 = vmul.f32 %v141_v36, %v116_v37 }
  0x48   :  { %v132_v46 = vadd.f32 %v131_v44, %v129_v39  ;;  %v134_v47 = vmul.f32 %v133_v41, %v127_v43  ;;  %v143_v48 = vadd.f32 %v142_v45, %v140_v40  ;;  %v145_v49 = vmul.f32 %v144_v42, %v127_v43 }
  0x4a   :  { %v135_v52 = vadd.f32 %v134_v47, %v132_v46  ;;  %v146_v53 = vadd.f32 %v145_v49, %v143_v48 }
  0x4c   :  { %v137_v54 = vadd.f32 %v136_v50, %v135_v52  ;;  %v148_v55 = vadd.f32 %v147_v51, %v146_v53 }
  0x4e   :  { %138 = vst [vmem:[%s337_s5] sm:$0x1] %v137_v54  ;;  %179 = vst [vmem:[%s337_s5 + $0x1] sm:$0x1] %v148_v55 }
  0x4f   :  { %155 = vsyncpa [#allocation3], 1 }
  0x50   :  { %156 = vsyncpa [#allocation5], 1 }
  0x51   :  { %157 = vsyncpa [#allocation8], 1 }

</bundles_post_ra>
